<compile_context>
chip_gen: v7x
topology: tpu7x:2x2x1
jax: 0.10.0
libtpu: 0.0.40
codegen_flags: <defaults>
</compile_context>

<pallas_src>
import jax
import jax.numpy as jnp
from jax.experimental import pallas as pl
from jax.experimental.pallas import tpu as pltpu

EPS = 1e-5       # PyTorch BatchNorm1d default eps
KPAD = 8         # input features zero-padded to one full sublane group


def _round_up(x, m):
    return ((x + m - 1) // m) * m


def _cdiv(a, b):
    return -(-a // b)


def _fold_bn(w, b, gamma, beta, mean, var, eps=EPS):
    """Fold eval-mode BatchNorm1d into the preceding Linear: y = x @ w' + b'."""
    scale = gamma * jax.lax.rsqrt(var + eps)          # (1, out)
    return w * scale, (b - mean) * scale + beta


def _make_kernel(in_features, layer1_on_mxu):
    def churn_kernel(x_ref, w1t_ref, b1_ref, w2t_ref, b2_ref, w3t_ref, b3_ref,
                     o_ref):
        # ---- Linear(in,256)+BN1 (folded), batch on lanes: h (256, tile_m) ----
        if layer1_on_mxu:
            # K = KPAD (8) matmul; MXU has large slack on v6e/v7x.
            h = jnp.dot(w1t_ref[...], x_ref[...],
                        preferred_element_type=jnp.float32) + b1_ref[...]
        else:
            # v5e path: keep layer 1 on the VPU as `in_features` outer-product FMAs.
            h = b1_ref[...] + w1t_ref[:, 0:1] * x_ref[0:1, :]
            for f in range(1, in_features):           # static (in_features == 3)
                h = h + w1t_ref[:, f:f + 1] * x_ref[f:f + 1, :]
        # ReLU directly into the layer-2 matmul input dtype (bf16 when use_bf16).
        h = jnp.maximum(h, 0.0).astype(w2t_ref.dtype)

        # ---- Linear(256,256)+BN2 (folded): dominant MXU matmul, f32 acc ----
        h = jnp.dot(w2t_ref[...], h,
                    preferred_element_type=jnp.float32) + b2_ref[...]
        h = jnp.maximum(h, 0.0)                       # (256, tile_m), f32

        # ---- Dropout(0.3): identity in eval mode ----

        # ---- Linear(256,1): (1,256) @ (256,tile_m) -> lane-dense (1,tile_m) ----
        out = jnp.dot(w3t_ref[...], h, preferred_element_type=jnp.float32)
        o_ref[...] = (out + b3_ref[0]).astype(o_ref.dtype)

    return churn_kernel


def churn_net_forward(x, params, *, tile_m_max=2048, use_bf16=True,
                      layer1_on_mxu=True):
    """Eval-mode ChurnNet forward.  x: (n, in_features) -> (n, 1) float32."""
    n, in_features = x.shape
    assert in_features <= KPAD

    # --- Host side: fold BN into the Linears, transpose to batch-on-lanes ---
    w1, b1 = _fold_bn(params["w1"], params["b1"], params["g1"], params["bt1"],
                      params["m1"], params["v1"])
    w2, b2 = _fold_bn(params["w2"], params["b2"], params["g2"], params["bt2"],
                      params["m2"], params["v2"])
    hidden = w1.shape[1]

    w1t = jnp.pad(w1.T, ((0, 0), (0, KPAD - in_features)))   # (256, KPAD)
    b1t = b1.reshape(hidden, 1)                              # (256, 1)
    w2t = w2.T                                               # (256, 256) (out, in)
    b2t = b2.reshape(hidden, 1)                              # (256, 1)
    w3t = params["w3"].T                                     # (1, 256)
    b3 = params["b3"].reshape(1)                             # (1,) -> SMEM scalar
    if use_bf16:
        w2t = w2t.astype(jnp.bfloat16)        # bf16 weights, f32 accumulation

    # --- Batch tiling: large adaptive 128-aligned tiles (amortize ~0.35us/step,
    #     limit pad waste), and >=2 tiles at large n so both v7x TCs are busy ---
    num_tiles = max(1, _cdiv(n, tile_m_max))
    if num_tiles == 1 and n >= 1024:
        num_tiles = 2
    tile_m = _round_up(_cdiv(n, num_tiles), 128)
    n_pad = tile_m * num_tiles

    xT = jnp.pad(x.T, ((0, KPAD - in_features), (0, n_pad - n)))  # (KPAD, n_pad)

    # --- Explicit VMEM budget (v5e scoped default 16MiB; v7x physical 64MiB) ---
    vmem_estimate = int(
        2 * (KPAD * tile_m * 4 + tile_m * 4)                  # double-buffered x / out
        + 2 * (w1t.size * 4 + w2t.size * w2t.dtype.itemsize
               + (b1t.size + b2t.size + w3t.size) * 4)        # resident weights
        + 4 * hidden * tile_m * 4)                            # h intermediates + slack
    vmem_limit = min(64 * 1024 * 1024, max(32 * 1024 * 1024, vmem_estimate))

    flops = 2 * n_pad * (KPAD * hidden + hidden * hidden + hidden)
    bytes_accessed = int(n_pad * KPAD * 4 + n_pad * 4
                         + w1t.size * 4 + b1t.size * 4
                         + w2t.size * w2t.dtype.itemsize + b2t.size * 4
                         + w3t.size * 4 + 4)

    const = lambda i: (0, 0)
    out_row = pl.pallas_call(
        _make_kernel(in_features, layer1_on_mxu),
        out_shape=jax.ShapeDtypeStruct((1, n_pad), jnp.float32),
        grid_spec=pltpu.PrefetchScalarGridSpec(
            num_scalar_prefetch=0,
            grid=(num_tiles,),
            in_specs=[
                pl.BlockSpec((KPAD, tile_m), lambda i: (0, i)),     # x^T tile
                pl.BlockSpec((hidden, KPAD), const),                # w1^T (folded)
                pl.BlockSpec((hidden, 1), const),                   # b1   (folded)
                pl.BlockSpec((hidden, hidden), const),              # w2^T (folded)
                pl.BlockSpec((hidden, 1), const),                   # b2   (folded)
                pl.BlockSpec((1, hidden), const),                   # w3^T
                pl.BlockSpec(memory_space=pltpu.MemorySpace.SMEM),  # b3 scalar
            ],
            out_specs=pl.BlockSpec((1, tile_m), lambda i: (0, i)),
        ),
        compiler_params=pltpu.CompilerParams(
            dimension_semantics=("parallel",),
            vmem_limit_bytes=vmem_limit),
        cost_estimate=pl.CostEstimate(
            flops=flops, transcendentals=0, bytes_accessed=bytes_accessed),
    )(xT, w1t, b1t, w2t, b2t, w3t, b3)

    return out_row[0, :n, None]                                     # (n, 1)


def init_params(key, input_size=3):
    """Deterministic Kaiming-uniform-style init (matches nn.Linear default bound)."""
    ks = jax.random.split(key, 6)

    def linear(kw, kb, fan_in, fan_out):
        bound = 1.0 / jnp.sqrt(fan_in)
        w = jax.random.uniform(kw, (fan_in, fan_out), jnp.float32, -bound, bound)
        b = jax.random.uniform(kb, (1, fan_out), jnp.float32, -bound, bound)
        return w, b

    w1, b1 = linear(ks[0], ks[1], input_size, 256)
    w2, b2 = linear(ks[2], ks[3], 256, 256)
    w3, b3 = linear(ks[4], ks[5], 256, 1)

    return dict(
        w1=w1, b1=b1,
        g1=jnp.ones((1, 256), jnp.float32), bt1=jnp.zeros((1, 256), jnp.float32),
        m1=jnp.zeros((1, 256), jnp.float32), v1=jnp.ones((1, 256), jnp.float32),
        w2=w2, b2=b2,
        g2=jnp.ones((1, 256), jnp.float32), bt2=jnp.zeros((1, 256), jnp.float32),
        m2=jnp.zeros((1, 256), jnp.float32), v2=jnp.ones((1, 256), jnp.float32),
        w3=w3, b3=b3,
    )


def reference_forward(x, p):
    """Pure-JAX f32 reference of the same eval-mode forward."""
    h = x @ p["w1"] + p["b1"]
    h = (h - p["m1"]) * (p["g1"] / jnp.sqrt(p["v1"] + EPS)) + p["bt1"]
    h = jnp.maximum(h, 0.0)
    h = h @ p["w2"] + p["b2"]
    h = (h - p["m2"]) * (p["g2"] / jnp.sqrt(p["v2"] + EPS)) + p["bt2"]
    h = jnp.maximum(h, 0.0)
    return h @ p["w3"] + p["b3"]


if __name__ == "__main__":
    key = jax.random.PRNGKey(0)
    k_param, k_x = jax.random.split(key)

    batch = 8
    input_size = 3
    params = init_params(k_param, input_size=input_size)
    x = jax.random.normal(k_x, (batch, input_size), dtype=jnp.float32)

    ref = reference_forward(x, params)

    # Full-f32 path (layer 1 on MXU): exact eval-mode semantics.
    out_f32 = jax.block_until_ready(
        churn_net_forward(x, params, use_bf16=False, layer1_on_mxu=True))
    assert out_f32.shape == (batch, 1)
    assert jnp.allclose(out_f32, ref, atol=1e-4, rtol=1e-4)

    # Default path (v6e/v7x): bf16 weights / f32 accumulation, layer 1 on MXU.
    out_bf16 = jax.block_until_ready(churn_net_forward(x, params))
    assert out_bf16.shape == (batch, 1)
    assert jnp.allclose(out_bf16, ref, atol=5e-2, rtol=5e-2)

    # v5e-style config: layer 1 kept on the VPU, bf16 w2 still on the MXU.
    out_v5e = jax.block_until_ready(
        churn_net_forward(x, params, layer1_on_mxu=False))
    assert out_v5e.shape == (batch, 1)
    assert jnp.allclose(out_v5e, ref, atol=5e-2, rtol=5e-2)

    print("KERNEL_OK")
</pallas_src>

<mosaic_0001>
module attributes {stable_mosaic.version = 11 : i64} {
  func.func @churn_kernel(%arg0: i32, %arg1: memref<8x128xf32, #tpu.memory_space<vmem>>, %arg2: memref<256x8xf32, #tpu.memory_space<vmem>>, %arg3: memref<256x1xf32, #tpu.memory_space<vmem>>, %arg4: memref<256x256xf32, #tpu.memory_space<vmem>>, %arg5: memref<256x1xf32, #tpu.memory_space<vmem>>, %arg6: memref<1x256xf32, #tpu.memory_space<vmem>>, %arg7: memref<1xf32, #tpu.memory_space<smem>>, %arg8: memref<1x128xf32, #tpu.memory_space<vmem>>) attributes {dimension_semantics = [#tpu.dimension_semantics<parallel>], iteration_bounds = array<i64: 1>, scalar_prefetch = 0 : i64, scratch_operands = 0 : i64, tpu.core_type = #tpu.core_type<tc>, window_params = [{transform_indices = @transform_0, window_bounds = array<i64: 8, 128>}, {pipeline_mode = #tpu.pipeline_mode<synchronous>, transform_indices = @transform_1, window_bounds = array<i64: 256, 8>}, {pipeline_mode = #tpu.pipeline_mode<synchronous>, transform_indices = @transform_2, window_bounds = array<i64: 256, 1>}, {pipeline_mode = #tpu.pipeline_mode<synchronous>, transform_indices = @transform_3, window_bounds = array<i64: 256, 256>}, {pipeline_mode = #tpu.pipeline_mode<synchronous>, transform_indices = @transform_4, window_bounds = array<i64: 256, 1>}, {pipeline_mode = #tpu.pipeline_mode<synchronous>, transform_indices = @transform_5, window_bounds = array<i64: 1, 256>}, {transform_indices = @transform_6, window_bounds = array<i64: 1>}, {transform_indices = @transform_7, window_bounds = array<i64: 1, 128>}]} {
    %c0 = arith.constant 0 : index
    %c0_0 = arith.constant 0 : index
    %0 = vector.load %arg2[%c0, %c0_0] : memref<256x8xf32, #tpu.memory_space<vmem>>, vector<256x8xf32>
    %c0_1 = arith.constant 0 : index
    %c0_2 = arith.constant 0 : index
    %1 = vector.load %arg1[%c0_1, %c0_2] : memref<8x128xf32, #tpu.memory_space<vmem>>, vector<8x128xf32>
    %cst = arith.constant dense<0.000000e+00> : vector<256x128xf32>
    %2 = tpu.matmul %0, %1, %cst {dimension_numbers = #tpu.dot_dimension_numbers<[1], [0], [0], [1], [0, 0, 1, 1], [], []>} : vector<256x8xf32>, vector<8x128xf32>, vector<256x128xf32> -> vector<256x128xf32>
    %c0_3 = arith.constant 0 : index
    %c0_4 = arith.constant 0 : index
    %3 = vector.load %arg3[%c0_3, %c0_4] : memref<256x1xf32, #tpu.memory_space<vmem>>, vector<256x1xf32>
    %4 = vector.broadcast %3 : vector<256x1xf32> to vector<256x128xf32>
    %5 = arith.addf %2, %4 : vector<256x128xf32>
    %cst_5 = arith.constant 0.000000e+00 : f32
    %6 = vector.broadcast %cst_5 : f32 to vector<256x128xf32>
    %7 = arith.maximumf %5, %6 : vector<256x128xf32>
    %c0_6 = arith.constant 0 : index
    %c0_7 = arith.constant 0 : index
    %8 = vector.load %arg4[%c0_6, %c0_7] : memref<256x256xf32, #tpu.memory_space<vmem>>, vector<256x256xf32>
    %cst_8 = arith.constant dense<0.000000e+00> : vector<256x128xf32>
    %9 = tpu.matmul %8, %7, %cst_8 {dimension_numbers = #tpu.dot_dimension_numbers<[1], [0], [0], [1], [0, 0, 1, 1], [], []>} : vector<256x256xf32>, vector<256x128xf32>, vector<256x128xf32> -> vector<256x128xf32>
    %c0_9 = arith.constant 0 : index
    %c0_10 = arith.constant 0 : index
    %10 = vector.load %arg5[%c0_9, %c0_10] : memref<256x1xf32, #tpu.memory_space<vmem>>, vector<256x1xf32>
    %11 = vector.broadcast %10 : vector<256x1xf32> to vector<256x128xf32>
    %12 = arith.addf %9, %11 : vector<256x128xf32>
    %cst_11 = arith.constant 0.000000e+00 : f32
    %13 = vector.broadcast %cst_11 : f32 to vector<256x128xf32>
    %14 = arith.maximumf %12, %13 : vector<256x128xf32>
    %c0_12 = arith.constant 0 : index
    %c0_13 = arith.constant 0 : index
    %15 = vector.load %arg6[%c0_12, %c0_13] : memref<1x256xf32, #tpu.memory_space<vmem>>, vector<1x256xf32>
    %cst_14 = arith.constant dense<0.000000e+00> : vector<1x128xf32>
    %16 = tpu.matmul %15, %14, %cst_14 {dimension_numbers = #tpu.dot_dimension_numbers<[1], [0], [0], [1], [0, 0, 1, 1], [], []>} : vector<1x256xf32>, vector<256x128xf32>, vector<1x128xf32> -> vector<1x128xf32>
    %c0_15 = arith.constant 0 : index
    %17 = memref.load %arg7[%c0_15] : memref<1xf32, #tpu.memory_space<smem>>
    %18 = vector.broadcast %17 : f32 to vector<1x128xf32>
    %19 = arith.addf %16, %18 : vector<1x128xf32>
    %c0_16 = arith.constant 0 : index
    %c0_17 = arith.constant 0 : index
    %20 = vector.load %arg8[%c0_16, %c0_17] : memref<1x128xf32, #tpu.memory_space<vmem>>, vector<1x128xf32>
    tpu.vector_store %arg8[%c0_16, %c0_17], %19 {strides = array<i32>} : memref<1x128xf32, #tpu.memory_space<vmem>>, vector<1x128xf32>,
    return
  }
  func.func @transform_0(%arg0: i32) -> (i32, i32) {
    %c0_i32 = arith.constant 0 : i32
    %c0_i32_0 = arith.constant 0 : i32
    return %c0_i32, %arg0 : i32, i32
  }
  func.func @transform_1(%arg0: i32) -> (i32, i32) {
    %c0_i32 = arith.constant 0 : i32
    %c0_i32_0 = arith.constant 0 : i32
    %c0_i32_1 = arith.constant 0 : i32
    return %c0_i32, %c0_i32_0 : i32, i32
  }
  func.func @transform_2(%arg0: i32) -> (i32, i32) {
    %c0_i32 = arith.constant 0 : i32
    %c0_i32_0 = arith.constant 0 : i32
    %c0_i32_1 = arith.constant 0 : i32
    return %c0_i32, %c0_i32_0 : i32, i32
  }
  func.func @transform_3(%arg0: i32) -> (i32, i32) {
    %c0_i32 = arith.constant 0 : i32
    %c0_i32_0 = arith.constant 0 : i32
    %c0_i32_1 = arith.constant 0 : i32
    return %c0_i32, %c0_i32_0 : i32, i32
  }
  func.func @transform_4(%arg0: i32) -> (i32, i32) {
    %c0_i32 = arith.constant 0 : i32
    %c0_i32_0 = arith.constant 0 : i32
    %c0_i32_1 = arith.constant 0 : i32
    return %c0_i32, %c0_i32_0 : i32, i32
  }
  func.func @transform_5(%arg0: i32) -> (i32, i32) {
    %c0_i32 = arith.constant 0 : i32
    %c0_i32_0 = arith.constant 0 : i32
    %c0_i32_1 = arith.constant 0 : i32
    return %c0_i32, %c0_i32_0 : i32, i32
  }
  func.func @transform_6(%arg0: i32) -> i32 {
    %c0_i32 = arith.constant 0 : i32
    %c0_i32_0 = arith.constant 0 : i32
    return %c0_i32 : i32
  }
  func.func @transform_7(%arg0: i32) -> (i32, i32) {
    %c0_i32 = arith.constant 0 : i32
    %c0_i32_0 = arith.constant 0 : i32
    return %c0_i32, %arg0 : i32, i32
  }
}

</mosaic_0001>

<bundles_post_ra>
// kernel: tpu_custom_call.1
= control target key start
LH: loop header
LB: loop body
LE: loop exit
PB: predicated region body
PF: predicated region fallthrough
CT: control target
= control target key end

     0   :  { %v1510_v3 = vmov 0   ;;  %vm253_vm0 = vcmask 64512   ;;  %s2169_s0 = inlined_call_operand.vmem [shape: f32[8,128], index: 0, kind: input, shape index: {}]   ;;  %s2170_s1 = inlined_call_operand.vmem [shape: f32[256,8], index: 1, kind: input, shape index: {}]   ;;  %s2171_s2 = inlined_call_operand.vmem [shape: f32[256,1], index: 2, kind: input, shape index: {}]   ;;  %s2172_s3 = inlined_call_operand.vmem [shape: f32[256,256], index: 3, kind: input, shape index: {}]   ;;  %s2173_s4 = inlined_call_operand.vmem [shape: f32[256,1], index: 4, kind: input, shape index: {}]   ;;  %s2174_s5 = inlined_call_operand.vmem [shape: f32[1,256], index: 5, kind: input, shape index: {}]   ;;  %s2175_s6 = inlined_call_operand.<no memory space> [shape: f32[1], index: 6, kind: input, shape index: {}]   ;;  %s2176_s7 = inlined_call_operand.hbm [shape: f32[1,128], index: 7, kind: output, shape index: {}]  }
   0x1   :  { %v60_v0 = vld [vmem:[%s2169_s0] sm:$0xff]  ;;  %v63_v1 = vld [vmem:[%s2171_s2 + $0x10] sm:$0xff]  ;;  %1485 = vset.pattern.permute.xlu1 %v1510_v3  ;;  %1484 = vset.pattern.permute.xlu0 %v1510_v3  ;;  %v29_v5 = vld [vmem:[%s2170_s1 + $0x8] sm:$0xff] }
   0x2   :  { %v61_v2 = vld [vmem:[%s2171_s2] sm:$0xff]  ;;  %1319 = vmatprep.subr.mxu0 %v60_v0  ;;  %105 = vperm.xlu1 %1485, %v63_v1   ;;  %v64_v6 = vld [vmem:[%s2171_s2 + $0x18] sm:$0xff]  ;;  %v30_v7 = vld [vmem:[%s2170_s1 + $0x10] sm:$0xff] }
   0x3   :  { %v28_v4 = vld [vmem:[%s2170_s1] sm:$0xff]  ;;  %95 = vperm.xlu0 %1484, %v61_v2   ;;  %1320 = vmatpush3.msra.mxu0 %v60_v0  ;;  %v62_v8 = vld [vmem:[%s2171_s2 + $0x8] sm:$0xff]  ;;  %v31_v9 = vld [vmem:[%s2170_s1 + $0x18] sm:$0xff] }
   0x4   :  { %1321 = vmatprep.mubr.msk.f32.mxu0 %vm253_vm0, %v28_v4  ;;  %v66_v10 = vld [vmem:[%s2171_s2 + $0x28] sm:$0xff]  ;;  %v32_v11 = vld [vmem:[%s2170_s1 + $0x20] sm:$0xff]  ;;  %v68_v14 = vld [vmem:[%s2171_s2 + $0x38] sm:$0xff] }
   0x5   :  { %1322 = vmatmul.mubr.msk.f32.vlgmr.msra.gmra.mrb[0].mxu0 %vm253_vm0, %v29_v5  ;;  %v65_v12 = vld [vmem:[%s2171_s2 + $0x20] sm:$0xff]  ;;  %v33_v13 = vld [vmem:[%s2170_s1 + $0x28] sm:$0xff]  ;;  %v34_v15 = vld [vmem:[%s2170_s1 + $0x30] sm:$0xff] }
   0x6   :  { %110 = vperm.xlu1 %1485, %v64_v6   ;;  %1324 = vmatprep.mubr.msk.f32.mxu0 %vm253_vm0, %v30_v7  ;;  %v67_v16 = vld [vmem:[%s2171_s2 + $0x30] sm:$0xff]  ;;  %v35_v17 = vld [vmem:[%s2170_s1 + $0x38] sm:$0xff]  ;;  %v70_v18 = vld [vmem:[%s2171_s2 + $0x48] sm:$0xff] }
   0x7   :  { %100 = vperm.xlu0 %1484, %v62_v8   ;;  %v36_v19 = vld [vmem:[%s2170_s1 + $0x40] sm:$0xff]  ;;  %v37_v21 = vld [vmem:[%s2170_s1 + $0x48] sm:$0xff]  ;;  %v72_v22 = vld [vmem:[%s2171_s2 + $0x58] sm:$0xff] }
   0x8   :  { %v69_v20 = vld [vmem:[%s2171_s2 + $0x40] sm:$0xff]  ;;  %v38_v23 = vld [vmem:[%s2170_s1 + $0x50] sm:$0xff]  ;;  %v39_v25 = vld [vmem:[%s2170_s1 + $0x58] sm:$0xff] }
   0x9   :  { %1325 = vmatmul.mubr.msk.f32.gmra.mrb[2].mxu0 %vm253_vm0, %v31_v9  ;;  %v71_v24 = vld [vmem:[%s2171_s2 + $0x50] sm:$0xff]  ;;  %v74_v26 = vld [vmem:[%s2171_s2 + $0x68] sm:$0xff]  ;;  %v40_v27 = vld [vmem:[%s2170_s1 + $0x60] sm:$0xff] }
   0xa   :  { %120 = vperm.xlu1 %1485, %v66_v10   ;;  %1327 = vmatprep.mubr.msk.f32.mxu0 %vm253_vm0, %v32_v11  ;;  %v73_v28 = vld [vmem:[%s2171_s2 + $0x60] sm:$0xff]  ;;  %v41_v29 = vld [vmem:[%s2170_s1 + $0x68] sm:$0xff]  ;;  %v76_v30 = vld [vmem:[%s2171_s2 + $0x78] sm:$0xff] }
   0xb   :  { %115 = vperm.xlu0 %1484, %v65_v12   ;;  %v42_v31 = vld [vmem:[%s2170_s1 + $0x70] sm:$0xff]  ;;  %v43_v33 = vld [vmem:[%s2170_s1 + $0x78] sm:$0xff]  ;;  %v78_v34 = vld [vmem:[%s2171_s2 + $0x88] sm:$0xff] }
   0xc   :  { %v75_v32 = vld [vmem:[%s2171_s2 + $0x70] sm:$0xff]  ;;  %v44_v35 = vld [vmem:[%s2170_s1 + $0x80] sm:$0xff] }
   0xd   :  { %1328 = vmatmul.mubr.msk.f32.gmra.mrb[4].mxu0 %vm253_vm0, %v33_v13  ;;  %v77_v36 = vld [vmem:[%s2171_s2 + $0x80] sm:$0xff] }
   0xe   :  { %130 = vperm.xlu1 %1485, %v68_v14   ;;  %1330 = vmatprep.mubr.msk.f32.mxu0 %vm253_vm0, %v34_v15 }
   0xf   :  { %125 = vperm.xlu0 %1484, %v67_v16  }
  0x11   :  { %1331 = vmatmul.mubr.msk.f32.gmra.mrb[6].mxu0 %vm253_vm0, %v35_v17 }
  0x12   :  { %140 = vperm.xlu1 %1485, %v70_v18   ;;  %1333 = vmatprep.mubr.msk.f32.mxu0 %vm253_vm0, %v36_v19 }
  0x13   :  { %135 = vperm.xlu0 %1484, %v69_v20  }
  0x15   :  { %1334 = vmatmul.mubr.msk.f32.gmra.mrb[8].mxu0 %vm253_vm0, %v37_v21 }
  0x16   :  { %150 = vperm.xlu1 %1485, %v72_v22   ;;  %1336 = vmatprep.mubr.msk.f32.mxu0 %vm253_vm0, %v38_v23 }
  0x17   :  { %145 = vperm.xlu0 %1484, %v71_v24  }
  0x19   :  { %1337 = vmatmul.mubr.msk.f32.gmra.mrb[10].mxu0 %vm253_vm0, %v39_v25 }
  0x1a   :  { %160 = vperm.xlu1 %1485, %v74_v26   ;;  %1339 = vmatprep.mubr.msk.f32.mxu0 %vm253_vm0, %v40_v27 }
  0x1b   :  { %155 = vperm.xlu0 %1484, %v73_v28  }
  0x1d   :  { %1340 = vmatmul.mubr.msk.f32.gmra.mrb[12].mxu0 %vm253_vm0, %v41_v29 }
  0x1e   :  { %170 = vperm.xlu1 %1485, %v76_v30   ;;  %1342 = vmatprep.mubr.msk.f32.mxu0 %vm253_vm0, %v42_v31 }
  0x1f   :  { %165 = vperm.xlu0 %1484, %v75_v32  }
  0x20   :  { %13 = vsyncpa [#allocation4], 0  ;;  %v45_v37 = vld [vmem:[%s2170_s1 + $0x88] sm:$0xff]  ;;  %v80_v38 = vld [vmem:[%s2171_s2 + $0x98] sm:$0xff]  ;;  %v1511_v19 = vmov 0.0|0.0   ;;  %s1512_s16 = smov [#allocation3]  }
  0x21   :  { %1343 = vmatmul.mubr.msk.f32.gmra.mrb[14].mxu0 %vm253_vm0, %v43_v33  ;;  %v46_v39 = vld [vmem:[%s2170_s1 + $0x90] sm:$0xff]  ;;  %v47_v41 = vld [vmem:[%s2170_s1 + $0x98] sm:$0xff]  ;;  %v82_v42 = vld [vmem:[%s2171_s2 + $0xa8] sm:$0xff]  ;;  %1449 = vmatprep.subr.bf16.mxu1 %v1511_v19 }
  0x22   :  { %180 = vperm.xlu1 %1485, %v78_v34   ;;  %1345 = vmatprep.mubr.msk.f32.mxu0 %vm253_vm0, %v44_v35  ;;  %v79_v40 = vld [vmem:[%s2171_s2 + $0x90] sm:$0xff]  ;;  %v48_v43 = vld [vmem:[%s2170_s1 + $0xa0] sm:$0xff]  ;;  %v49_v45 = vld [vmem:[%s2170_s1 + $0xa8] sm:$0xff] }
  0x23   :  { %175 = vperm.xlu0 %1484, %v77_v36   ;;  %v81_v44 = vld [vmem:[%s2171_s2 + $0xa0] sm:$0xff]  ;;  %v84_v46 = vld [vmem:[%s2171_s2 + $0xb8] sm:$0xff]  ;;  %v50_v47 = vld [vmem:[%s2170_s1 + $0xb0] sm:$0xff]  ;;  %1369 = vmatprep.subr.bf16.mxu0 %v1511_v19 }
  0x24   :  { %v83_v48 = vld [vmem:[%s2171_s2 + $0xb0] sm:$0xff]  ;;  %v51_v49 = vld [vmem:[%s2170_s1 + $0xb8] sm:$0xff]  ;;  %v86_v50 = vld [vmem:[%s2171_s2 + $0xc8] sm:$0xff] }
  0x25   :  { %1346 = vmatmul.mubr.msk.f32.gmra.mrb[16].mxu0 %vm253_vm0, %v45_v37  ;;  %v52_v51 = vld [vmem:[%s2170_s1 + $0xc0] sm:$0xff]  ;;  %v53_v53 = vld [vmem:[%s2170_s1 + $0xc8] sm:$0xff]  ;;  %v88_v54 = vld [vmem:[%s2171_s2 + $0xd8] sm:$0xff] }
  0x26   :  { %190 = vperm.xlu1 %1485, %v80_v38   ;;  %1348 = vmatprep.mubr.msk.f32.mxu0 %vm253_vm0, %v46_v39  ;;  %v85_v52 = vld [vmem:[%s2171_s2 + $0xc0] sm:$0xff]  ;;  %v54_v55 = vld [vmem:[%s2170_s1 + $0xd0] sm:$0xff]  ;;  %v55_v57 = vld [vmem:[%s2170_s1 + $0xd8] sm:$0xff] }
  0x27   :  { %185 = vperm.xlu0 %1484, %v79_v40   ;;  %v87_v56 = vld [vmem:[%s2171_s2 + $0xd0] sm:$0xff]  ;;  %v90_v58 = vld [vmem:[%s2171_s2 + $0xe8] sm:$0xff]  ;;  %v56_v59 = vld [vmem:[%s2170_s1 + $0xe0] sm:$0xff] }
  0x28   :  { %v89_v60 = vld [vmem:[%s2171_s2 + $0xe0] sm:$0xff]  ;;  %v57_v61 = vld [vmem:[%s2170_s1 + $0xe8] sm:$0xff]  ;;  %v92_v62 = vld [vmem:[%s2171_s2 + $0xf8] sm:$0xff] }
  0x29   :  { %1349 = vmatmul.mubr.msk.f32.gmra.mrb[18].mxu0 %vm253_vm0, %v47_v41  ;;  %v58_v63 = vld [vmem:[%s2170_s1 + $0xf0] sm:$0xff]  ;;  %v59_v1 = vld [vmem:[%s2170_s1 + $0xf8] sm:$0xff]  ;;  %v688_v2 = vld [vmem:[%s2173_s4 + $0x88] sm:$0xff]  ;;  %s1211_s1 = sshll.u32 %s1512_s16, 4  ;;  %s1212_s1 = int_to_ptr.vmem [resolvable:$true] %s1211_s1 }
  0x2a   :  { %200 = vperm.xlu1 %1485, %v82_v42   ;;  %1351 = vmatprep.mubr.msk.f32.mxu0 %vm253_vm0, %v48_v43  ;;  %v91_v0 = vld [vmem:[%s2171_s2 + $0xf0] sm:$0xff]  ;;  %v687_v3 = vld [vmem:[%s2173_s4 + $0x80] sm:$0xff]  ;;  %v672_v4 = vld [vmem:[%s2173_s4 + $0x8] sm:$0xff]  ;;  %s1486_s17 = scalar_lea.vmem %s1212_s1, 16  ;;  %s1490_s18 = scalar_lea.vmem %s1212_s1, 32 }
  0x2b   :  { %195 = vperm.xlu0 %1484, %v81_v44   ;;  %v671_v5 = vld [vmem:[%s2173_s4] sm:$0xff]  ;;  %v690_v6 = vld [vmem:[%s2173_s4 + $0x98] sm:$0xff]  ;;  %v689_v7 = vld [vmem:[%s2173_s4 + $0x90] sm:$0xff]  ;;  %p1487_p0 = scmp.ne.s32.totalorder %s1212_s1, %s1486_s17  ;;  %p1491_p1 = scmp.lt.s32.totalorder %s1212_s1, %s1212_s1 }
  0x2c   :  { %v674_v8 = vld [vmem:[%s2173_s4 + $0x18] sm:$0xff]  ;;  %v673_v9 = vld [vmem:[%s2173_s4 + $0x10] sm:$0xff]  ;;  %v692_v10 = vld [vmem:[%s2173_s4 + $0xa8] sm:$0xff]  ;;  %p1492_p2 = scmp.lt.s32.totalorder %s1490_s18, %s1486_s17 }
  0x2d   :  { %1352 = vmatmul.mubr.msk.f32.gmra.mrb[20].mxu0 %vm253_vm0, %v49_v45  ;;  %v691_v11 = vld [vmem:[%s2173_s4 + $0xa0] sm:$0xff]  ;;  %v676_v12 = vld [vmem:[%s2173_s4 + $0x28] sm:$0xff]  ;;  %v694_v14 = vld [vmem:[%s2173_s4 + $0xb8] sm:$0xff] }
  0x2e   :  { %210 = vperm.xlu1 %1485, %v84_v46   ;;  %1354 = vmatprep.mubr.msk.f32.mxu0 %vm253_vm0, %v50_v47  ;;  %v675_v13 = vld [vmem:[%s2173_s4 + $0x20] sm:$0xff]  ;;  %v693_v15 = vld [vmem:[%s2173_s4 + $0xb0] sm:$0xff]  ;;  %v678_v16 = vld [vmem:[%s2173_s4 + $0x38] sm:$0xff]  ;;  %p1493_p3 = por %p1492_p2, %p1491_p1 }
  0x2f   :  { %205 = vperm.xlu0 %1484, %v83_v48   ;;  %v677_v17 = vld [vmem:[%s2173_s4 + $0x30] sm:$0xff]  ;;  %v696_v18 = vld [vmem:[%s2173_s4 + $0xc8] sm:$0xff]  ;;  %v695_v20 = vld [vmem:[%s2173_s4 + $0xc0] sm:$0xff] }
  0x30   :  { %v680_v21 = vld [vmem:[%s2173_s4 + $0x48] sm:$0xff]  ;;  %v679_v22 = vld [vmem:[%s2173_s4 + $0x40] sm:$0xff]  ;;  %v698_v23 = vld [vmem:[%s2173_s4 + $0xd8] sm:$0xff]  ;;  %p1494_p4 = pnand %p1493_p3, %p1487_p0 }
  0x31   :  { %1355 = vmatmul.mubr.msk.f32.gmra.mrb[22].mxu0 %vm253_vm0, %v51_v49  ;;  %v697_v24 = vld [vmem:[%s2173_s4 + $0xd0] sm:$0xff]  ;;  %v682_v25 = vld [vmem:[%s2173_s4 + $0x58] sm:$0xff]  ;;  %v700_v27 = vld [vmem:[%s2173_s4 + $0xe8] sm:$0xff] }
  0x32   :  { %220 = vperm.xlu1 %1485, %v86_v50   ;;  %1357 = vmatprep.mubr.msk.f32.mxu0 %vm253_vm0, %v52_v51  ;;  %v681_v26 = vld [vmem:[%s2173_s4 + $0x50] sm:$0xff]  ;;  %v699_v28 = vld [vmem:[%s2173_s4 + $0xe0] sm:$0xff]  ;;  %v684_v29 = vld [vmem:[%s2173_s4 + $0x68] sm:$0xff] }
  0x33   :  { %215 = vperm.xlu0 %1484, %v85_v52   ;;  %v683_v30 = vld [vmem:[%s2173_s4 + $0x60] sm:$0xff]  ;;  %v702_v31 = vld [vmem:[%s2173_s4 + $0xf8] sm:$0xff]  ;;  %v701_v32 = vld [vmem:[%s2173_s4 + $0xf0] sm:$0xff] }
  0x34   :  { %v686_v33 = vld [vmem:[%s2173_s4 + $0x78] sm:$0xff]  ;;  %v685_v34 = vld [vmem:[%s2173_s4 + $0x70] sm:$0xff]  ;;  %v608_v35 = vld [vmem:[%s2172_s3 + $0x8] sm:$0xff] }
  0x35   :  { %1358 = vmatmul.mubr.msk.f32.gmra.mrb[24].mxu0 %vm253_vm0, %v53_v53  ;;  %v638_v36 = vld [vmem:[%s2172_s3 + $0xf8] sm:$0xff] }
  0x36   :  { %230 = vperm.xlu1 %1485, %v88_v54   ;;  %1360 = vmatprep.mubr.msk.f32.mxu0 %vm253_vm0, %v54_v55 }
  0x37   :  { %225 = vperm.xlu0 %1484, %v87_v56   ;;  %1002 = vmatprep.mubr.f32.mxu1 %v638_v36 }
  0x39   :  { %1361 = vmatmul.mubr.msk.f32.gmra.mrb[26].mxu0 %vm253_vm0, %v55_v57 }
  0x3a   :  { %240 = vperm.xlu1 %1485, %v90_v58   ;;  %1363 = vmatprep.mubr.msk.f32.mxu0 %vm253_vm0, %v56_v59 }
  0x3b   :  { %235 = vperm.xlu0 %1484, %v89_v60  }
  0x3d   :  { %1364 = vmatmul.mubr.msk.f32.gmra.mrb[28].mxu0 %vm253_vm0, %v57_v61 }
  0x3e   :  { %250 = vperm.xlu1 %1485, %v92_v62   ;;  %1366 = vmatprep.mubr.msk.f32.mxu0 %vm253_vm0, %v58_v63 }
  0x3f   :  { %245 = vperm.xlu0 %1484, %v91_v0  }
  0x41   :  { %1367 = vmatmul.mubr.msk.f32.gmra.mrb[30].mxu0 %vm253_vm0, %v59_v1 }
  0x42   :  { %790 = vperm.xlu1 %1485, %v688_v2   ;;  %927 = vmatprep.mubr.f32.mxu0 %v608_v35 }
  0x43   :  { %785 = vperm.xlu0 %1484, %v687_v3  }
  0x46   :  { %710 = vperm.xlu1 %1485, %v672_v4  }
  0x47   :  { %705 = vperm.xlu0 %1484, %v671_v5  }
  0x4a   :  { %800 = vperm.xlu1 %1485, %v690_v6  }
  0x4b   :  { %795 = vperm.xlu0 %1484, %v689_v7  }
  0x4e   :  { %720 = vperm.xlu1 %1485, %v674_v8  }
  0x4f   :  { %715 = vperm.xlu0 %1484, %v673_v9  }
  0x52   :  { %810 = vperm.xlu1 %1485, %v692_v10  }
  0x53   :  { %805 = vperm.xlu0 %1484, %v691_v11  }
  0x56   :  { %730 = vperm.xlu1 %1485, %v676_v12  }
  0x57   :  { %725 = vperm.xlu0 %1484, %v675_v13  }
  0x5a   :  { %820 = vperm.xlu1 %1485, %v694_v14  }
  0x5b   :  { %815 = vperm.xlu0 %1484, %v693_v15  }
  0x5e   :  { %740 = vperm.xlu1 %1485, %v678_v16  }
  0x5f   :  { %735 = vperm.xlu0 %1484, %v677_v17  }
  0x62   :  { %830 = vperm.xlu1 %1485, %v696_v18  }
  0x63   :  { %825 = vperm.xlu0 %1484, %v695_v20  }
  0x66   :  { %750 = vperm.xlu1 %1485, %v680_v21  }
  0x67   :  { %745 = vperm.xlu0 %1484, %v679_v22  }
  0x6a   :  { %840 = vperm.xlu1 %1485, %v698_v23  }
  0x6b   :  { %835 = vperm.xlu0 %1484, %v697_v24  }
  0x6e   :  { %760 = vperm.xlu1 %1485, %v682_v25  }
  0x6f   :  { %755 = vperm.xlu0 %1484, %v681_v26  }
  0x72   :  { %850 = vperm.xlu1 %1485, %v700_v27  }
  0x73   :  { %845 = vperm.xlu0 %1484, %v699_v28  }
  0x76   :  { %770 = vperm.xlu1 %1485, %v684_v29  }
  0x77   :  { %765 = vperm.xlu0 %1484, %v683_v30  }
  0x7a   :  { %860 = vperm.xlu1 %1485, %v702_v31  }
  0x7b   :  { %855 = vperm.xlu0 %1484, %v701_v32  }
  0x7e   :  { %780 = vperm.xlu1 %1485, %v686_v33  }
  0x7f   :  { %775 = vperm.xlu0 %1484, %v685_v34  }
  0x81   :  { %v106_v37 = vpop.permute.xlu1 %105 }
  0x82   :  { %v96_v38 = vpop.permute.xlu0 %95 }
  0x85   :  { %v111_v39 = vpop.permute.xlu1 %110 }
  0x86   :  { %v101_v40 = vpop.permute.xlu0 %100 }
  0x89   :  { %v121_v41 = vpop.permute.xlu1 %120 }
  0x8a   :  { %v116_v42 = vpop.permute.xlu0 %115 }
  0x8d   :  { %v131_v43 = vpop.permute.xlu1 %130 }
  0x8e   :  { %v126_v44 = vpop.permute.xlu0 %125 }
  0x91   :  { %v141_v45 = vpop.permute.xlu1 %140 }
  0x92   :  { %v136_v46 = vpop.permute.xlu0 %135 }
  0x95   :  { %v151_v47 = vpop.permute.xlu1 %150 }
  0x96   :  { %v146_v49 = vpop.permute.xlu0 %145 }
  0x99   :  { %v161_v58 = vpop.permute.xlu1 %160 }
  0x9a   :  { %v156_v61 = vpop.permute.xlu0 %155 }
  0x9d   :  { %v171_v6 = vpop.permute.xlu1 %170 }
  0x9e   :  { %v166_v9 = vpop.permute.xlu0 %165 }
  0xa1   :  { %v181_v20 = vpop.permute.xlu1 %180 }
  0xa2   :  { %v176_v23 = vpop.permute.xlu0 %175 }
  0xa5   :  { %v191_v32 = vpop.permute.xlu1 %190 }
  0xa6   :  { %v186_v35 = vpop.permute.xlu0 %185 }
  0xd8   :  { %v1323_v48 = vpop.f32.mrb[0].mxu0 }
  0xd9   :  { %v422_v50 = vadd.f32 %v1323_v48, %v101_v40  ;;  %v416_v51 = vpop.f32.mrb[1].mxu0  ;;  %v196_v48 = vpop.permute.xlu0 %195 }
  0xda   :  { %v417_v52 = vadd.f32 %v416_v51, %v96_v38 }
  0xdb   :  { %v576_v53 = vmax.f32 %v422_v50, 0.0 }
  0xdc   :  { %v575_v54 = vmax.f32 %v417_v52, 0.0  ;;  %v1326_v55 = vpop.f32.mrb[2].mxu0 }
  0xdd   :  { %v432_v56 = vadd.f32 %v1326_v55, %v111_v39  ;;  %v426_v57 = vpop.f32.mrb[3].mxu0 }
  0xde   :  { %v1370_v59 = vpack.c.bf16 %v576_v53, %v575_v54  ;;  %v427_v60 = vadd.f32 %v426_v57, %v106_v37 }
  0xdf   :  { %v578_v62 = vmax.f32 %v432_v56, 0.0 }
  0xe0   :  { %v577_v63 = vmax.f32 %v427_v60, 0.0  ;;  %v1329_v0 = vpop.f32.mrb[4].mxu0  ;;  %1371 = vmatpush1.bf16.msra.mxu0 %v1370_v59  ;;  %1465 = vmatpush1.bf16.msra.mxu1 %v1370_v59  ;;  %v206_v60 = vpop.permute.xlu0 %205 }
  0xe1   :  { %v442_v1 = vadd.f32 %v1329_v0, %v121_v41  ;;  %v436_v2 = vpop.f32.mrb[5].mxu0  ;;  %1372 = vmatprep.subr.bf16.mxu0 %v1511_v19  ;;  %1450 = vmatprep.subr.bf16.mxu1 %v1511_v19 }
  0xe2   :  { %v1373_v3 = vpack.c.bf16 %v578_v62, %v577_v63  ;;  %v437_v4 = vadd.f32 %v436_v2, %v116_v42 }
  0xe3   :  { %v580_v5 = vmax.f32 %v442_v1, 0.0 }
  0xe4   :  { %v579_v7 = vmax.f32 %v437_v4, 0.0  ;;  %v1332_v8 = vpop.f32.mrb[6].mxu0  ;;  %1374 = vmatpush1.bf16.msra.mxu0 %v1373_v3  ;;  %1466 = vmatpush1.bf16.msra.mxu1 %v1373_v3 }
  0xe5   :  { %v452_v10 = vadd.f32 %v1332_v8, %v131_v43  ;;  %v446_v11 = vpop.f32.mrb[7].mxu0  ;;  %1375 = vmatprep.subr.bf16.mxu0 %v1511_v19  ;;  %1451 = vmatprep.subr.bf16.mxu1 %v1511_v19 }
  0xe6   :  { %v1376_v12 = vpack.c.bf16 %v580_v5, %v579_v7  ;;  %v447_v13 = vadd.f32 %v446_v11, %v126_v44 }
  0xe7   :  { %v582_v14 = vmax.f32 %v452_v10, 0.0 }
  0xe8   :  { %v581_v15 = vmax.f32 %v447_v13, 0.0  ;;  %v1335_v16 = vpop.f32.mrb[8].mxu0  ;;  %1377 = vmatpush1.bf16.msra.mxu0 %v1376_v12  ;;  %1467 = vmatpush1.bf16.msra.mxu1 %v1376_v12 }
  0xe9   :  { %v462_v17 = vadd.f32 %v1335_v16, %v141_v45  ;;  %v456_v18 = vpop.f32.mrb[9].mxu0  ;;  %1378 = vmatprep.subr.bf16.mxu0 %v1511_v19  ;;  %1452 = vmatprep.subr.bf16.mxu1 %v1511_v19  ;;  %v201_v45 = vpop.permute.xlu1 %200 }
  0xea   :  { %v1379_v21 = vpack.c.bf16 %v582_v14, %v581_v15  ;;  %v457_v22 = vadd.f32 %v456_v18, %v136_v46 }
  0xeb   :  { %v584_v24 = vmax.f32 %v462_v17, 0.0 }
  0xec   :  { %v583_v25 = vmax.f32 %v457_v22, 0.0  ;;  %v1338_v26 = vpop.f32.mrb[10].mxu0  ;;  %1380 = vmatpush1.bf16.msra.mxu0 %v1379_v21  ;;  %1468 = vmatpush1.bf16.msra.mxu1 %v1379_v21 }
  0xed   :  { %v472_v27 = vadd.f32 %v1338_v26, %v151_v47  ;;  %v466_v28 = vpop.f32.mrb[11].mxu0  ;;  %1381 = vmatprep.subr.bf16.mxu0 %v1511_v19  ;;  %1453 = vmatprep.subr.bf16.mxu1 %v1511_v19  ;;  %v211_v57 = vpop.permute.xlu1 %210 }
  0xee   :  { %v1382_v29 = vpack.c.bf16 %v584_v24, %v583_v25  ;;  %v467_v30 = vadd.f32 %v466_v28, %v146_v49 }
  0xef   :  { %v586_v31 = vmax.f32 %v472_v27, 0.0 }
  0xf0   :  { %v585_v33 = vmax.f32 %v467_v30, 0.0  ;;  %v1341_v34 = vpop.f32.mrb[12].mxu0  ;;  %1383 = vmatpush1.bf16.msra.mxu0 %v1382_v29  ;;  %1469 = vmatpush1.bf16.msra.mxu1 %v1382_v29 }
  0xf1   :  { %v482_v36 = vadd.f32 %v1341_v34, %v161_v58  ;;  %v476_v37 = vpop.f32.mrb[13].mxu0  ;;  %1384 = vmatprep.subr.bf16.mxu0 %v1511_v19  ;;  %1454 = vmatprep.subr.bf16.mxu1 %v1511_v19 }
  0xf2   :  { %v1385_v38 = vpack.c.bf16 %v586_v31, %v585_v33  ;;  %v477_v39 = vadd.f32 %v476_v37, %v156_v61 }
  0xf3   :  { %v588_v40 = vmax.f32 %v482_v36, 0.0 }
  0xf4   :  { %v587_v41 = vmax.f32 %v477_v39, 0.0  ;;  %v1344_v42 = vpop.f32.mrb[14].mxu0  ;;  %1386 = vmatpush1.bf16.msra.mxu0 %v1385_v38  ;;  %1470 = vmatpush1.bf16.msra.mxu1 %v1385_v38 }
  0xf5   :  { %v492_v43 = vadd.f32 %v1344_v42, %v171_v6  ;;  %v486_v44 = vpop.f32.mrb[15].mxu0  ;;  %1387 = vmatprep.subr.bf16.mxu0 %v1511_v19  ;;  %1455 = vmatprep.subr.bf16.mxu1 %v1511_v19  ;;  %v221_v6 = vpop.permute.xlu1 %220 }
  0xf6   :  { %v1388_v46 = vpack.c.bf16 %v588_v40, %v587_v41  ;;  %v487_v47 = vadd.f32 %v486_v44, %v166_v9  ;;  %v216_v9 = vpop.permute.xlu0 %215 }
  0xf7   :  { %v590_v49 = vmax.f32 %v492_v43, 0.0 }
  0xf8   :  { %v589_v50 = vmax.f32 %v487_v47, 0.0  ;;  %v1347_v51 = vpop.f32.mrb[16].mxu0  ;;  %1389 = vmatpush1.bf16.msra.mxu0 %v1388_v46  ;;  %1471 = vmatpush1.bf16.msra.mxu1 %v1388_v46 }
  0xf9   :  { %v502_v52 = vadd.f32 %v1347_v51, %v181_v20  ;;  %v496_v53 = vpop.f32.mrb[17].mxu0  ;;  %1390 = vmatprep.subr.bf16.mxu0 %v1511_v19  ;;  %1456 = vmatprep.subr.bf16.mxu1 %v1511_v19  ;;  %v231_v18 = vpop.permute.xlu1 %230 }
  0xfa   :  { %v1391_v54 = vpack.c.bf16 %v590_v49, %v589_v50  ;;  %v497_v55 = vadd.f32 %v496_v53, %v176_v23  ;;  %v226_v22 = vpop.permute.xlu0 %225 }
  0xfb   :  { %v592_v56 = vmax.f32 %v502_v52, 0.0 }
  0xfc   :  { %v591_v58 = vmax.f32 %v497_v55, 0.0  ;;  %v1350_v59 = vpop.f32.mrb[18].mxu0  ;;  %1392 = vmatpush1.bf16.msra.mxu0 %v1391_v54  ;;  %1472 = vmatpush1.bf16.msra.mxu1 %v1391_v54  ;;  %v607_v55 = vld [vmem:[%s2172_s3] sm:$0xff] }
  0xfd   :  { %v512_v61 = vadd.f32 %v1350_v59, %v191_v32  ;;  %v506_v62 = vpop.f32.mrb[19].mxu0  ;;  %1393 = vmatprep.subr.bf16.mxu0 %v1511_v19  ;;  %1457 = vmatprep.subr.bf16.mxu1 %v1511_v19  ;;  %v241_v32 = vpop.permute.xlu1 %240  ;;  %v639_v59 = vld [vmem:[%s2172_s3 + $0x100] sm:$0xff] }
  0xfe   :  { %v1394_v63 = vpack.c.bf16 %v592_v56, %v591_v58  ;;  %v507_v0 = vadd.f32 %v506_v62, %v186_v35  ;;  %v236_v35 = vpop.permute.xlu0 %235  ;;  %v637_v56 = vld [vmem:[%s2172_s3 + $0xf0] sm:$0xff]  ;;  %v640_v58 = vld [vmem:[%s2172_s3 + $0x108] sm:$0xff]  ;;  %v611_v62 = vld [vmem:[%s2172_s3 + $0x20] sm:$0xff] }
  0xff   :  { %v594_v1 = vmax.f32 %v512_v61, 0.0  ;;  %v642_v61 = vld [vmem:[%s2172_s3 + $0x118] sm:$0xff] }
 0x100   :  { %v593_v2 = vmax.f32 %v507_v0, 0.0  ;;  %v1353_v3 = vpop.f32.mrb[20].mxu0  ;;  %1395 = vmatpush1.bf16.msra.mxu0 %v1394_v63  ;;  %1473 = vmatpush1.bf16.msra.mxu1 %v1394_v63  ;;  %v641_v63 = vld [vmem:[%s2172_s3 + $0x110] sm:$0xff]  ;;  %v614_v0 = vld [vmem:[%s2172_s3 + $0x38] sm:$0xff] }
 0x101   :  { %v522_v4 = vadd.f32 %v1353_v3, %v201_v45  ;;  %v516_v5 = vpop.f32.mrb[21].mxu0  ;;  %1396 = vmatprep.subr.bf16.mxu0 %v1511_v19  ;;  %1458 = vmatprep.subr.bf16.mxu1 %v1511_v19  ;;  %v251_v44 = vpop.permute.xlu1 %250  ;;  %v643_v3 = vld [vmem:[%s2172_s3 + $0x120] sm:$0xff] }
 0x102   :  { %v1397_v7 = vpack.c.bf16 %v594_v1, %v593_v2  ;;  %v517_v8 = vadd.f32 %v516_v5, %v196_v48  ;;  %v246_v47 = vpop.permute.xlu0 %245  ;;  %v644_v1 = vld [vmem:[%s2172_s3 + $0x128] sm:$0xff]  ;;  %v613_v2 = vld [vmem:[%s2172_s3 + $0x30] sm:$0xff]  ;;  %v646_v5 = vld [vmem:[%s2172_s3 + $0x138] sm:$0xff] }
 0x103   :  { %v596_v10 = vmax.f32 %v522_v4, 0.0  ;;  %v616_v4 = vld [vmem:[%s2172_s3 + $0x48] sm:$0xff] }
 0x104   :  { %v595_v11 = vmax.f32 %v517_v8, 0.0  ;;  %v1356_v12 = vpop.f32.mrb[22].mxu0  ;;  %1398 = vmatpush1.bf16.msra.mxu0 %v1397_v7  ;;  %1474 = vmatpush1.bf16.msra.mxu1 %v1397_v7  ;;  %v645_v7 = vld [vmem:[%s2172_s3 + $0x130] sm:$0xff]  ;;  %v618_v8 = vld [vmem:[%s2172_s3 + $0x58] sm:$0xff] }
 0x105   :  { %v532_v13 = vadd.f32 %v1356_v12, %v211_v57  ;;  %v526_v14 = vpop.f32.mrb[23].mxu0  ;;  %1399 = vmatprep.subr.bf16.mxu0 %v1511_v19  ;;  %1459 = vmatprep.subr.bf16.mxu1 %v1511_v19  ;;  %v610_v57 = vld [vmem:[%s2172_s3 + $0x18] sm:$0xff]  ;;  %v620_v12 = vld [vmem:[%s2172_s3 + $0x68] sm:$0xff] }
 0x106   :  { %v1400_v15 = vpack.c.bf16 %v596_v10, %v595_v11  ;;  %v527_v16 = vadd.f32 %v526_v14, %v206_v60  ;;  %v612_v60 = vld [vmem:[%s2172_s3 + $0x28] sm:$0xff]  ;;  %v617_v10 = vld [vmem:[%s2172_s3 + $0x50] sm:$0xff]  ;;  %v647_v11 = vld [vmem:[%s2172_s3 + $0x140] sm:$0xff] }
 0x107   :  { %v598_v17 = vmax.f32 %v532_v13, 0.0  ;;  %v650_v13 = vld [vmem:[%s2172_s3 + $0x158] sm:$0xff]  ;;  %v619_v14 = vld [vmem:[%s2172_s3 + $0x60] sm:$0xff] }
 0x108   :  { %v597_v20 = vmax.f32 %v527_v16, 0.0  ;;  %v1359_v21 = vpop.f32.mrb[24].mxu0  ;;  %1401 = vmatpush1.bf16.msra.mxu0 %v1400_v15  ;;  %1475 = vmatpush1.bf16.msra.mxu1 %v1400_v15  ;;  %v649_v15 = vld [vmem:[%s2172_s3 + $0x150] sm:$0xff]  ;;  %v622_v16 = vld [vmem:[%s2172_s3 + $0x78] sm:$0xff] }
 0x109   :  { %v542_v23 = vadd.f32 %v1359_v21, %v221_v6  ;;  %v536_v24 = vpop.f32.mrb[25].mxu0  ;;  %1402 = vmatprep.subr.bf16.mxu0 %v1511_v19  ;;  %1460 = vmatprep.subr.bf16.mxu1 %v1511_v19  ;;  %v615_v6 = vld [vmem:[%s2172_s3 + $0x40] sm:$0xff]  ;;  %v624_v21 = vld [vmem:[%s2172_s3 + $0x88] sm:$0xff] }
 0x10a   :  { %v1403_v25 = vpack.c.bf16 %v598_v17, %v597_v20  ;;  %v537_v26 = vadd.f32 %v536_v24, %v216_v9  ;;  %v648_v9 = vld [vmem:[%s2172_s3 + $0x148] sm:$0xff]  ;;  %v651_v20 = vld [vmem:[%s2172_s3 + $0x160] sm:$0xff]  ;;  %v653_v24 = vld [vmem:[%s2172_s3 + $0x170] sm:$0xff] }
 0x10b   :  { %v600_v27 = vmax.f32 %v542_v23, 0.0  ;;  %v652_v17 = vld [vmem:[%s2172_s3 + $0x168] sm:$0xff]  ;;  %v623_v23 = vld [vmem:[%s2172_s3 + $0x80] sm:$0xff] }
 0x10c   :  { %v599_v28 = vmax.f32 %v537_v26, 0.0  ;;  %v1362_v29 = vpop.f32.mrb[26].mxu0  ;;  %1404 = vmatpush1.bf16.msra.mxu0 %v1403_v25  ;;  %1476 = vmatpush1.bf16.msra.mxu1 %v1403_v25  ;;  %v626_v25 = vld [vmem:[%s2172_s3 + $0x98] sm:$0xff]  ;;  %v656_v26 = vld [vmem:[%s2172_s3 + $0x188] sm:$0xff] }
 0x10d   :  { %v552_v30 = vadd.f32 %v1362_v29, %v231_v18  ;;  %v546_v31 = vpop.f32.mrb[27].mxu0  ;;  %1405 = vmatprep.subr.bf16.mxu0 %v1511_v19  ;;  %1461 = vmatprep.subr.bf16.mxu1 %v1511_v19  ;;  %v621_v18 = vld [vmem:[%s2172_s3 + $0x70] sm:$0xff]  ;;  %v628_v29 = vld [vmem:[%s2172_s3 + $0xa8] sm:$0xff] }
 0x10e   :  { %v1406_v33 = vpack.c.bf16 %v600_v27, %v599_v28  ;;  %v547_v34 = vadd.f32 %v546_v31, %v226_v22  ;;  %v654_v22 = vld [vmem:[%s2172_s3 + $0x178] sm:$0xff]  ;;  %v625_v27 = vld [vmem:[%s2172_s3 + $0x90] sm:$0xff]  ;;  %v655_v28 = vld [vmem:[%s2172_s3 + $0x180] sm:$0xff] }
 0x10f   :  { %v602_v36 = vmax.f32 %v552_v30, 0.0  ;;  %v658_v30 = vld [vmem:[%s2172_s3 + $0x198] sm:$0xff]  ;;  %v627_v31 = vld [vmem:[%s2172_s3 + $0xa0] sm:$0xff] }
 0x110   :  { %v601_v37 = vmax.f32 %v547_v34, 0.0  ;;  %v1365_v38 = vpop.f32.mrb[28].mxu0  ;;  %1407 = vmatpush1.bf16.msra.mxu0 %v1406_v33  ;;  %1477 = vmatpush1.bf16.msra.mxu1 %v1406_v33  ;;  %v630_v33 = vld [vmem:[%s2172_s3 + $0xb8] sm:$0xff]  ;;  %v660_v34 = vld [vmem:[%s2172_s3 + $0x1a8] sm:$0xff] }
 0x111   :  { %v562_v39 = vadd.f32 %v1365_v38, %v241_v32  ;;  %v556_v40 = vpop.f32.mrb[29].mxu0  ;;  %1408 = vmatprep.subr.bf16.mxu0 %v1511_v19  ;;  %1462 = vmatprep.subr.bf16.mxu1 %v1511_v19  ;;  %v657_v32 = vld [vmem:[%s2172_s3 + $0x190] sm:$0xff]  ;;  %v662_v38 = vld [vmem:[%s2172_s3 + $0x1b8] sm:$0xff] }
 0x112   :  { %v1409_v41 = vpack.c.bf16 %v602_v36, %v601_v37  ;;  %v557_v42 = vadd.f32 %v556_v40, %v236_v35  ;;  %v629_v35 = vld [vmem:[%s2172_s3 + $0xb0] sm:$0xff]  ;;  %v659_v36 = vld [vmem:[%s2172_s3 + $0x1a0] sm:$0xff]  ;;  %v632_v37 = vld [vmem:[%s2172_s3 + $0xc8] sm:$0xff] }
 0x113   :  { %v604_v43 = vmax.f32 %v562_v39, 0.0  ;;  %v631_v39 = vld [vmem:[%s2172_s3 + $0xc0] sm:$0xff]  ;;  %v661_v40 = vld [vmem:[%s2172_s3 + $0x1b0] sm:$0xff] }
 0x114   :  { %v603_v45 = vmax.f32 %v557_v42, 0.0  ;;  %v1368_v46 = vpop.f32.mrb[30].mxu0  ;;  %1410 = vmatpush1.bf16.msra.mxu0 %v1409_v41  ;;  %1478 = vmatpush1.bf16.msra.mxu1 %v1409_v41  ;;  %v634_v41 = vld [vmem:[%s2172_s3 + $0xd8] sm:$0xff]  ;;  %v664_v42 = vld [vmem:[%s2172_s3 + $0x1c8] sm:$0xff] }
 0x115   :  { %v572_v48 = vadd.f32 %v1368_v46, %v251_v44  ;;  %v566_v49 = vpop.f32.mrb[31].mxu0  ;;  %1411 = vmatprep.subr.bf16.mxu0 %v1511_v19  ;;  %1463 = vmatprep.subr.bf16.mxu1 %v1511_v19  ;;  %v663_v44 = vld [vmem:[%s2172_s3 + $0x1c0] sm:$0xff]  ;;  %v666_v46 = vld [vmem:[%s2172_s3 + $0x1d8] sm:$0xff] }
 0x116   :  { %v1412_v50 = vpack.c.bf16 %v604_v43, %v603_v45  ;;  %v567_v51 = vadd.f32 %v566_v49, %v246_v47  ;;  %v633_v43 = vld [vmem:[%s2172_s3 + $0xd0] sm:$0xff]  ;;  %v636_v45 = vld [vmem:[%s2172_s3 + $0xe8] sm:$0xff]  ;;  %v635_v47 = vld [vmem:[%s2172_s3 + $0xe0] sm:$0xff] }
 0x117   :  { %v606_v52 = vmax.f32 %v572_v48, 0.0  ;;  %v665_v48 = vld [vmem:[%s2172_s3 + $0x1d0] sm:$0xff]  ;;  %v668_v49 = vld [vmem:[%s2172_s3 + $0x1e8] sm:$0xff] }
 0x118   :  { %v605_v53 = vmax.f32 %v567_v51, 0.0  ;;  %1413 = vmatpush1.bf16.msra.mxu0 %v1412_v50  ;;  %1479 = vmatpush1.bf16.msra.mxu1 %v1412_v50  ;;  %v667_v50 = vld [vmem:[%s2172_s3 + $0x1e0] sm:$0xff]  ;;  %v670_v51 = vld [vmem:[%s2172_s3 + $0x1f8] sm:$0xff] }
 0x119   :  { %1414 = vmatprep.subr.bf16.mxu0 %v1511_v19  ;;  %1464 = vmatprep.subr.bf16.mxu1 %v1511_v19  ;;  %v609_v19 = vld [vmem:[%s2172_s3 + $0x10] sm:$0xff] }
 0x11a   :  { %v1415_v54 = vpack.c.bf16 %v606_v52, %v605_v53  ;;  %v669_v52 = vld [vmem:[%s2172_s3 + $0x1f0] sm:$0xff]  ;;  %v1124_v53 = vlaneseq }
 0x11c   :  { %1416 = vmatpush1.bf16.msra.mxu0 %v1415_v54  ;;  %1480 = vmatpush1.bf16.msra.mxu1 %v1415_v54  ;;  %v1125_v54 = vshrl.u32 %v1124_v53, 7 }
 0x11f   :  { %928 = vmatmul.mubr.f32.vlgmr.msra.gmra.mrb[32].mxu0 %v607_v55  ;;  %1003 = vmatmul.mubr.f32.vlgmr.msra.gmra.mrb[0].mxu1 %v637_v56  ;;  %v1130_v55 = vsub.s32 1, %v1125_v54  ;;  %v1120_v56 = vld [vmem:[%s2174_s5] sm:$0x3] }
 0x120   :  { %932 = vmatprep.mubr.f32.mxu0 %v610_v57  ;;  %1007 = vmatprep.mubr.f32.mxu1 %v640_v58  ;;  %v1126_v57 = vsub.s32 0, %v1125_v54 }
 0x121   :  { %v1131_v58 = vrot.slane %v1120_v56, %v1130_v55 }
 0x123   :  { %933 = vmatmul.mubr.f32.gmra.mrb[34].mxu0 %v609_v19  ;;  %1008 = vmatmul.mubr.f32.gmra.mrb[2].mxu1 %v639_v59  ;;  %v2103_v19 = vrot.slane %v1120_v56, %v1126_v57  ;;  %v791_v59 = vpop.permute.xlu1 %790 }
 0x124   :  { %937 = vmatprep.mubr.f32.mxu0 %v612_v60  ;;  %1012 = vmatprep.mubr.f32.mxu1 %v642_v61  ;;  %v786_v60 = vpop.permute.xlu0 %785 }
 0x127   :  { %938 = vmatmul.mubr.f32.gmra.mrb[36].mxu0 %v611_v62  ;;  %1013 = vmatmul.mubr.f32.gmra.mrb[4].mxu1 %v641_v63  ;;  %v711_v61 = vpop.permute.xlu1 %710 }
 0x128   :  { %942 = vmatprep.mubr.f32.mxu0 %v614_v0  ;;  %1017 = vmatprep.mubr.f32.mxu1 %v644_v1  ;;  %v706_v62 = vpop.permute.xlu0 %705 }
 0x12b   :  { %943 = vmatmul.mubr.f32.gmra.mrb[38].mxu0 %v613_v2  ;;  %1018 = vmatmul.mubr.f32.gmra.mrb[6].mxu1 %v643_v3  ;;  %v801_v63 = vpop.permute.xlu1 %800 }
 0x12c   :  { %947 = vmatprep.mubr.f32.mxu0 %v616_v4  ;;  %1022 = vmatprep.mubr.f32.mxu1 %v646_v5  ;;  %v796_v0 = vpop.permute.xlu0 %795 }
 0x12f   :  { %948 = vmatmul.mubr.f32.gmra.mrb[40].mxu0 %v615_v6  ;;  %1023 = vmatmul.mubr.f32.gmra.mrb[8].mxu1 %v645_v7  ;;  %v721_v1 = vpop.permute.xlu1 %720 }
 0x130   :  { %952 = vmatprep.mubr.f32.mxu0 %v618_v8  ;;  %1027 = vmatprep.mubr.f32.mxu1 %v648_v9  ;;  %v716_v2 = vpop.permute.xlu0 %715 }
 0x133   :  { %953 = vmatmul.mubr.f32.gmra.mrb[42].mxu0 %v617_v10  ;;  %1028 = vmatmul.mubr.f32.gmra.mrb[10].mxu1 %v647_v11  ;;  %v2105_v3 = vpop.permute.xlu1 %810 }
 0x134   :  { %957 = vmatprep.mubr.f32.mxu0 %v620_v12  ;;  %1032 = vmatprep.mubr.f32.mxu1 %v650_v13  ;;  %v2107_v4 = vpop.permute.xlu0 %805 }
 0x137   :  { %958 = vmatmul.mubr.f32.gmra.mrb[44].mxu0 %v619_v14  ;;  %1033 = vmatmul.mubr.f32.gmra.mrb[12].mxu1 %v649_v15  ;;  %v731_v5 = vpop.permute.xlu1 %730 }
 0x138   :  { %962 = vmatprep.mubr.f32.mxu0 %v622_v16  ;;  %1037 = vmatprep.mubr.f32.mxu1 %v652_v17  ;;  %v726_v6 = vpop.permute.xlu0 %725 }
 0x13b   :  { %963 = vmatmul.mubr.f32.gmra.mrb[46].mxu0 %v621_v18  ;;  %1038 = vmatmul.mubr.f32.gmra.mrb[14].mxu1 %v651_v20  ;;  %v2109_v7 = vpop.permute.xlu1 %820 }
 0x13c   :  { %967 = vmatprep.mubr.f32.mxu0 %v624_v21  ;;  %1042 = vmatprep.mubr.f32.mxu1 %v654_v22  ;;  %v2111_v8 = vpop.permute.xlu0 %815 }
 0x13f   :  { %968 = vmatmul.mubr.f32.gmra.mrb[48].mxu0 %v623_v23  ;;  %1043 = vmatmul.mubr.f32.gmra.mrb[16].mxu1 %v653_v24  ;;  %v2113_v9 = vpop.permute.xlu1 %740 }
 0x140   :  { %972 = vmatprep.mubr.f32.mxu0 %v626_v25  ;;  %1047 = vmatprep.mubr.f32.mxu1 %v656_v26  ;;  %v2115_v10 = vpop.permute.xlu0 %735 }
 0x143   :  { %973 = vmatmul.mubr.f32.gmra.mrb[50].mxu0 %v625_v27  ;;  %1048 = vmatmul.mubr.f32.gmra.mrb[18].mxu1 %v655_v28  ;;  %v2117_v11 = vpop.permute.xlu1 %830 }
 0x144   :  { %977 = vmatprep.mubr.f32.mxu0 %v628_v29  ;;  %1052 = vmatprep.mubr.f32.mxu1 %v658_v30  ;;  %v2119_v12 = vpop.permute.xlu0 %825 }
 0x147   :  { %978 = vmatmul.mubr.f32.gmra.mrb[52].mxu0 %v627_v31  ;;  %1053 = vmatmul.mubr.f32.gmra.mrb[20].mxu1 %v657_v32  ;;  %v2123_v24 = vpop.permute.xlu1 %750 }
 0x148   :  { %982 = vmatprep.mubr.f32.mxu0 %v630_v33  ;;  %1057 = vmatprep.mubr.f32.mxu1 %v660_v34  ;;  %v2125_v25 = vpop.permute.xlu0 %745 }
 0x14b   :  { %983 = vmatmul.mubr.f32.gmra.mrb[54].mxu0 %v629_v35  ;;  %1058 = vmatmul.mubr.f32.gmra.mrb[22].mxu1 %v659_v36 }
 0x14c   :  { %987 = vmatprep.mubr.f32.mxu0 %v632_v37  ;;  %1062 = vmatprep.mubr.f32.mxu1 %v662_v38 }
 0x14f   :  { %988 = vmatmul.mubr.f32.gmra.mrb[56].mxu0 %v631_v39  ;;  %1063 = vmatmul.mubr.f32.gmra.mrb[24].mxu1 %v661_v40 }
 0x150   :  { %992 = vmatprep.mubr.f32.mxu0 %v634_v41  ;;  %1067 = vmatprep.mubr.f32.mxu1 %v664_v42 }
 0x153   :  { %993 = vmatmul.mubr.f32.gmra.mrb[58].mxu0 %v633_v43  ;;  %1068 = vmatmul.mubr.f32.gmra.mrb[26].mxu1 %v663_v44  ;;  %v2127_v44 = vpop.permute.xlu1 %840 }
 0x154   :  { %997 = vmatprep.mubr.f32.mxu0 %v636_v45  ;;  %1072 = vmatprep.mubr.f32.mxu1 %v666_v46  ;;  %v2129_v45 = vpop.permute.xlu0 %835 }
 0x157   :  { %998 = vmatmul.mubr.f32.gmra.mrb[60].mxu0 %v635_v47  ;;  %1073 = vmatmul.mubr.f32.gmra.mrb[28].mxu1 %v665_v48 }
 0x158   :  { %1077 = vmatprep.mubr.f32.mxu1 %v668_v49  ;;  %1198 = vmatprep.mubr.f32.mxu0 %v1131_v58 }
 0x15b   :  { %1078 = vmatmul.mubr.f32.gmra.mrb[30].mxu1 %v667_v50 }
 0x15c   :  { %1082 = vmatprep.mubr.f32.mxu1 %v670_v51 }
 0x15f   :  { %1083 = vmatmul.mubr.f32.gmra.mrb[32].mxu1 %v669_v52 }
 0x1f2   :  { %v929_v13 = vpop.f32.mrb[32].mxu0  ;;  %v2121_v14 = vpop.f32.mrb[0].mxu1 }
 0x1f3   :  { %v1006_v15 = vpop.f32.mrb[1].mxu1  ;;  %v931_v16 = vpop.f32.mrb[33].mxu0  ;;  %v930_v17 = vadd.f32 %v929_v13, %v706_v62 }
 0x1f5   :  { %v1088_v26 = vmax.f32 %v930_v17, 0.0 }
 0x1f6   :  { %v934_v18 = vpop.f32.mrb[34].mxu0  ;;  %v1009_v20 = vpop.f32.mrb[2].mxu1 }
 0x1f7   :  { %v935_v21 = vadd.f32 %v934_v18, %v711_v61  ;;  %v1011_v22 = vpop.f32.mrb[3].mxu1  ;;  %v936_v23 = vpop.f32.mrb[35].mxu0  ;;  %v1010_v28 = vadd.f32 %v1009_v20, %v786_v60 }
 0x1f9   :  { %v1089_v27 = vmax.f32 %v935_v21, 0.0  ;;  %v1104_v35 = vmax.f32 %v1010_v28, 0.0 }
 0x1fa   :  { %v939_v29 = vpop.f32.mrb[36].mxu0  ;;  %v1014_v30 = vpop.f32.mrb[4].mxu1 }
 0x1fb   :  { %v1419_v31 = vpack.c.bf16 %v1089_v27, %v1088_v26  ;;  %v1015_v32 = vadd.f32 %v1014_v30, %v791_v59  ;;  %v1016_v33 = vpop.f32.mrb[5].mxu1  ;;  %v941_v34 = vpop.f32.mrb[37].mxu0  ;;  %v940_v36 = vadd.f32 %v939_v29, %v716_v2 }
 0x1fc   :  { %v2131_v2 = vpop.permute.xlu1 %760 }
 0x1fd   :  { %v1105_v37 = vmax.f32 %v1015_v32, 0.0  ;;  %v1090_v46 = vmax.f32 %v940_v36, 0.0 }
 0x1fe   :  { %v944_v38 = vpop.f32.mrb[38].mxu0  ;;  %v1019_v39 = vpop.f32.mrb[6].mxu1 }
 0x1ff   :  { %v1417_v40 = vpack.c.bf16 %v1105_v37, %v1104_v35  ;;  %v945_v41 = vadd.f32 %v944_v38, %v721_v1  ;;  %v1021_v42 = vpop.f32.mrb[7].mxu1  ;;  %v946_v43 = vpop.f32.mrb[39].mxu0  ;;  %v1020_v48 = vadd.f32 %v1019_v39, %v796_v0 }
 0x200   :  { %v756_v0 = vpop.permute.xlu0 %755 }
 0x201   :  { %v1091_v47 = vmax.f32 %v945_v41, 0.0  ;;  %1418 = vmatprep.subr.bf16.mxu0 %v1417_v40  ;;  %v1106_v55 = vmax.f32 %v1020_v48, 0.0 }
 0x202   :  { %v949_v49 = vpop.f32.mrb[40].mxu0  ;;  %v1024_v50 = vpop.f32.mrb[8].mxu1  ;;  %1420 = vmatpush3.bf16.msra.mxu0 %v1419_v31 }
 0x203   :  { %v1423_v51 = vpack.c.bf16 %v1091_v47, %v1090_v46  ;;  %v1025_v52 = vadd.f32 %v1024_v50, %v801_v63  ;;  %v1026_v53 = vpop.f32.mrb[9].mxu1  ;;  %v951_v54 = vpop.f32.mrb[41].mxu0  ;;  %v950_v56 = vadd.f32 %v949_v49, %v726_v6 }
 0x204   :  { %v2137_v31 = vpop.permute.xlu1 %850  ;;  %v2139_v32 = vpop.permute.xlu0 %845 }
 0x205   :  { %v1107_v57 = vmax.f32 %v1025_v52, 0.0  ;;  %v1092_v13 = vmax.f32 %v950_v56, 0.0 }
 0x206   :  { %v954_v58 = vpop.f32.mrb[42].mxu0  ;;  %v1029_v59 = vpop.f32.mrb[10].mxu1 }
 0x207   :  { %v1421_v60 = vpack.c.bf16 %v1107_v57, %v1106_v55  ;;  %v955_v61 = vadd.f32 %v954_v58, %v731_v5  ;;  %v1031_v62 = vpop.f32.mrb[11].mxu1  ;;  %v956_v1 = vpop.f32.mrb[43].mxu0  ;;  %v1030_v16 = vadd.f32 %v1029_v59, %v2107_v4 }
 0x208   :  { %v771_v49 = vpop.permute.xlu1 %770  ;;  %v766_v50 = vpop.permute.xlu0 %765 }
 0x209   :  { %v1093_v15 = vmax.f32 %v955_v61, 0.0  ;;  %1422 = vmatprep.subr.bf16.mxu0 %v1421_v60  ;;  %v1108_v22 = vmax.f32 %v1030_v16, 0.0 }
 0x20a   :  { %v959_v63 = vpop.f32.mrb[44].mxu0  ;;  %v1034_v17 = vpop.f32.mrb[12].mxu1  ;;  %1424 = vmatpush3.bf16.msra.mxu0 %v1423_v51 }
 0x20b   :  { %v1427_v18 = vpack.c.bf16 %v1093_v15, %v1092_v13  ;;  %v1035_v6 = vadd.f32 %v1034_v17, %v2105_v3  ;;  %v1036_v20 = vpop.f32.mrb[13].mxu1  ;;  %v961_v21 = vpop.f32.mrb[45].mxu0  ;;  %v960_v5 = vadd.f32 %v959_v63, %v2115_v10 }
 0x20c   :  { %v856_v16 = vpop.permute.xlu0 %855 }
 0x20d   :  { %v1109_v23 = vmax.f32 %v1035_v6, 0.0  ;;  %v1094_v33 = vmax.f32 %v960_v5, 0.0 }
 0x20e   :  { %v964_v26 = vpop.f32.mrb[46].mxu0  ;;  %v1039_v27 = vpop.f32.mrb[14].mxu1 }
 0x20f   :  { %v1425_v28 = vpack.c.bf16 %v1109_v23, %v1108_v22  ;;  %v965_v29 = vadd.f32 %v964_v26, %v2113_v9  ;;  %v1041_v30 = vpop.f32.mrb[15].mxu1  ;;  %v966_v4 = vpop.f32.mrb[47].mxu0  ;;  %v1040_v3 = vadd.f32 %v1039_v27, %v2111_v8 }
 0x211   :  { %v1095_v34 = vmax.f32 %v965_v29, 0.0  ;;  %1426 = vmatprep.subr.bf16.mxu0 %v1425_v28  ;;  %v1110_v9 = vmax.f32 %v1040_v3, 0.0 }
 0x212   :  { %v969_v35 = vpop.f32.mrb[48].mxu0  ;;  %v1044_v36 = vpop.f32.mrb[16].mxu1  ;;  %1428 = vmatpush3.bf16.msra.mxu0 %v1427_v18 }
 0x213   :  { %v1431_v10 = vpack.c.bf16 %v1095_v34, %v1094_v33  ;;  %v1045_v37 = vadd.f32 %v1044_v36, %v2109_v7  ;;  %v1046_v38 = vpop.f32.mrb[17].mxu1  ;;  %v971_v39 = vpop.f32.mrb[49].mxu0  ;;  %v970_v40 = vadd.f32 %v969_v35, %v2125_v25 }
 0x215   :  { %v1111_v41 = vmax.f32 %v1045_v37, 0.0  ;;  %v1096_v51 = vmax.f32 %v970_v40, 0.0 }
 0x216   :  { %v974_v42 = vpop.f32.mrb[50].mxu0  ;;  %v1049_v43 = vpop.f32.mrb[18].mxu1 }
 0x217   :  { %v1429_v46 = vpack.c.bf16 %v1111_v41, %v1110_v9  ;;  %v975_v47 = vadd.f32 %v974_v42, %v2123_v24  ;;  %v1051_v48 = vpop.f32.mrb[19].mxu1  ;;  %v976_v8 = vpop.f32.mrb[51].mxu0  ;;  %v1050_v53 = vadd.f32 %v1049_v43, %v2119_v12 }
 0x218   :  { %v861_v12 = vpop.permute.xlu1 %860 }
 0x219   :  { %v1097_v52 = vmax.f32 %v975_v47, 0.0  ;;  %1430 = vmatprep.subr.bf16.mxu0 %v1429_v46  ;;  %v1112_v58 = vmax.f32 %v1050_v53, 0.0 }
 0x21a   :  { %v979_v7 = vpop.f32.mrb[52].mxu0  ;;  %v1054_v54 = vpop.f32.mrb[20].mxu1  ;;  %1432 = vmatpush3.bf16.msra.mxu0 %v1431_v10 }
 0x21b   :  { %v1435_v55 = vpack.c.bf16 %v1097_v52, %v1096_v51  ;;  %v1055_v25 = vadd.f32 %v1054_v54, %v2117_v11  ;;  %v1056_v56 = vpop.f32.mrb[21].mxu1  ;;  %v981_v57 = vpop.f32.mrb[53].mxu0  ;;  %v980_v59 = vadd.f32 %v979_v7, %v756_v0 }
 0x21c   :  { %v781_v33 = vpop.permute.xlu1 %780 }
 0x21d   :  { %v1113_v24 = vmax.f32 %v1055_v25, 0.0  ;;  %v1098_v63 = vmax.f32 %v980_v59, 0.0  ;;  %v1005_v34 = vadd.f32 %v2121_v14, %v781_v33 }
 0x21e   :  { %v984_v60 = vpop.f32.mrb[54].mxu0  ;;  %v1059_v61 = vpop.f32.mrb[22].mxu1 }
 0x21f   :  { %v1433_v62 = vpack.c.bf16 %v1113_v24, %v1112_v58  ;;  %v985_v1 = vadd.f32 %v984_v60, %v2131_v2  ;;  %v1061_v13 = vpop.f32.mrb[23].mxu1  ;;  %v986_v15 = vpop.f32.mrb[55].mxu0  ;;  %v1060_v18 = vadd.f32 %v1059_v61, %v2129_v45  ;;  %v1103_v41 = vmax.f32 %v1005_v34, 0.0 }
 0x220   :  { %v776_v45 = vpop.permute.xlu0 %775 }
 0x221   :  { %v1099_v17 = vmax.f32 %v985_v1, 0.0  ;;  %1434 = vmatprep.subr.bf16.mxu0 %v1433_v62  ;;  %v1114_v5 = vmax.f32 %v1060_v18, 0.0 }
 0x222   :  { %v989_v11 = vpop.f32.mrb[56].mxu0  ;;  %v1064_v6 = vpop.f32.mrb[24].mxu1  ;;  %1436 = vmatpush3.bf16.msra.mxu0 %v1435_v55  ;;  %v1122_v55 = vstv %s2175_s6 }
 0x223   :  { %v1439_v20 = vpack.c.bf16 %v1099_v17, %v1098_v63  ;;  %v1065_v0 = vadd.f32 %v1064_v6, %v2127_v44  ;;  %v1066_v21 = vpop.f32.mrb[25].mxu1  ;;  %v991_v22 = vpop.f32.mrb[57].mxu0  ;;  %v990_v23 = vadd.f32 %v989_v11, %v766_v50 }
 0x225   :  { %v1115_v2 = vmax.f32 %v1065_v0, 0.0  ;;  %v1100_v3 = vmax.f32 %v990_v23, 0.0 }
 0x226   :  { %v994_v26 = vpop.f32.mrb[58].mxu0  ;;  %v1069_v27 = vpop.f32.mrb[26].mxu1 }
 0x227   :  { %v1437_v28 = vpack.c.bf16 %v1115_v2, %v1114_v5  ;;  %v995_v29 = vadd.f32 %v994_v26, %v771_v49  ;;  %v1071_v30 = vpop.f32.mrb[27].mxu1  ;;  %v996_v4 = vpop.f32.mrb[59].mxu0  ;;  %v1070_v36 = vadd.f32 %v1069_v27, %v2139_v32 }
 0x229   :  { %v1101_v35 = vmax.f32 %v995_v29, 0.0  ;;  %1438 = vmatprep.subr.bf16.mxu0 %v1437_v28  ;;  %v1116_v42 = vmax.f32 %v1070_v36, 0.0 }
 0x22a   :  { %v999_v44 = vpop.f32.mrb[60].mxu0  ;;  %v1074_v10 = vpop.f32.mrb[28].mxu1  ;;  %1440 = vmatpush3.bf16.msra.mxu0 %v1439_v20 }
 0x22b   :  { %v1443_v37 = vpack.c.bf16 %v1101_v35, %v1100_v3  ;;  %v1000_v38 = vadd.f32 %v999_v44, %v776_v45  ;;  %v1075_v39 = vadd.f32 %v1074_v10, %v2137_v31  ;;  %v1076_v9 = vpop.f32.mrb[29].mxu1  ;;  %v1001_v40 = vpop.f32.mrb[61].mxu0 }
 0x22d   :  { %v1102_v43 = vmax.f32 %v1000_v38, 0.0  ;;  %v1117_v46 = vmax.f32 %v1075_v39, 0.0 }
 0x22e   :  { %v1079_v47 = vpop.f32.mrb[30].mxu1 }
 0x22f   :  { %v1447_v14 = vpack.c.bf16 %v1103_v41, %v1102_v43  ;;  %v1441_v48 = vpack.c.bf16 %v1117_v46, %v1116_v42  ;;  %v1081_v8 = vpop.f32.mrb[31].mxu1  ;;  %v1080_v49 = vadd.f32 %v1079_v47, %v856_v16 }
 0x231   :  { %1442 = vmatprep.subr.bf16.mxu0 %v1441_v48  ;;  %v1118_v52 = vmax.f32 %v1080_v49, 0.0 }
 0x232   :  { %v1084_v32 = vpop.f32.mrb[32].mxu1  ;;  %1444 = vmatpush3.bf16.msra.mxu0 %v1443_v37 }
 0x233   :  { %v1085_v50 = vadd.f32 %v1084_v32, %v861_v12  ;;  %v1086_v51 = vpop.f32.mrb[33].mxu1 }
 0x235   :  { %v1119_v53 = vmax.f32 %v1085_v50, 0.0 }
 0x237   :  { %v1445_v7 = vpack.c.bf16 %v1119_v53, %v1118_v52 }
 0x239   :  { %1446 = vmatprep.subr.bf16.mxu0 %v1445_v7 }
 0x23a   :  { %1448 = vmatpush3.bf16.msra.mxu0 %v1447_v14 }
 0x23d   :  { %1199 = vmatmul.mubr.f32.vlgmr.msra.gmra.mrb[62].mxu0 %v2103_v19 }
 0x310   :  { %v1316_v31 = vpop.f32.mrb[62].mxu0 }
 0x311   :  { %v1317_v54 = vpop.f32.mrb[63].mxu0 }
 0x312   :  { %v1318_v25 = vadd.f32 %v1317_v54, %v1316_v31 }
 0x314   :  { %v1201_v56 = vadd.f32 %v1318_v25, %v1122_v55 }
 0x316   :  { %1204 = vst [vmem:[#allocation3] sm:$0x1] %v1201_v56 }
 0x317   :  { %1497 = shalt.err (!%p1494_p4)
}
 0x318   :  { %s1498_s21 = scalar_lea.hbm %s2176_s7, 16 }
 0x319   :  { %p1499_p5 = scmp.ne.s32.totalorder %s2176_s7, %s1498_s21  ;;  %p1502_p6 = scmp.lt.u32.totalorder %s1498_s21, %s2176_s7 }
 0x31b   :  { %p1504_p7 = pnand %p1502_p6, %p1499_p5 }
 0x31d   :  { %1507 = shalt.err (!%p1504_p7)
}
 0x31e   :  { %1214 = dma.vmem_to_hbm [thread:$0]  %s1212_s1, 16, %s2176_s7, [#allocation4]  }
 0x31f   :  { %1508 = dma.done.wait [#allocation4], 16  }
 0x320   :  { %1509 = vsyncadd [#allocation4], 4294967280 }
 0x321   :  { %1218 = vsyncpa [#allocation4], 1 }

</bundles_post_ra>
